<compile_context>
chip_gen: v7x
topology: tpu7x:2x2x1
jax: 0.10.0
libtpu: 0.0.40
codegen_flags: <defaults>
</compile_context>

<pallas_src>
import functools

import jax
import jax.numpy as jnp
from jax import lax
from jax.experimental import pallas as pl
from jax.experimental.pallas import tpu as pltpu


# ---------------------------------------------------------------------------
# VMEM sizing helpers
# ---------------------------------------------------------------------------

def _vmem_limit_bytes():
    """~72% of per-core VMEM (headroom for Mosaic scratch / spills)."""
    cap = 64 * 1024 * 1024
    try:
        info = pltpu.get_tpu_info()
        cap = int(getattr(info, "vmem_capacity_bytes", cap) or cap)
    except Exception:
        pass
    return max(32 * 1024 * 1024, min(int(cap * 0.72), 100 * 1024 * 1024))


def _pick_tiled_params(G, M, Lf, dsize, vmem_limit):
    """Jointly choose (M_blk, chunk) for the tiled path.

    Block VMEM estimate per lane per (g, m): 2x(in)+2x(out) double buffers in
    the input dtype plus ~3 f32-sized in-kernel temporaries.
    """
    q = max(8, 32 // dsize)               # sublane packing quantum for this dtype
    budget = vmem_limit // 2               # keep blocks + temps well inside the limit
    per_lane = lambda d: G * d * (4 * dsize + 12)

    # Candidate M_blk: divisors of M that are multiples of 8 (BlockSpec rule),
    # or M itself.  Prefer: fits budget > (dtype-packed AND 2-core parallel) >
    # dtype-packed > 2-core parallel > larger.
    cands = [d for d in range(1, M + 1) if M % d == 0 and (d % 8 == 0 or d == M)]

    def key(d):
        fits = per_lane(d) * 128 <= budget
        qal = (d % q == 0)
        par = (M // d) >= 2
        return (fits, qal and par, qal, par, d)

    m_blk = max(cands, key=key)
    if per_lane(m_blk) * 128 > budget:      # nothing fits: take the smallest block
        m_blk = min(cands)

    # Largest multiple of 128 dividing Lf, within the lane budget.  Cap at 8192
    # lanes (bounds the unrolled chunk->128 fold; >=512 KiB blocks already sit
    # near the HBM roofline).
    max_lanes = budget // per_lane(m_blk)
    max_lanes = max(128, min(8192, (max_lanes // 128) * 128))
    chunk = 128
    for c in range(min(max_lanes, Lf) // 128, 0, -1):
        if Lf % (c * 128) == 0:
            chunk = c * 128
            break
    return m_blk, chunk


# ---------------------------------------------------------------------------
# Kernels
# ---------------------------------------------------------------------------

def _mbstd_tiled_kernel(x_ref, o_ref, acc_ref, *,
                        G, M_blk, chunk, ndata, nd_total, HW, F, inv_count):
    """Blocks are (G, M_blk, chunk).  Grid = (M_tiles, nd_total + nstat).

    For j < nd_total the block is a pass-through data chunk belonging to
    feature f = j // ndata (accumulate partial std sums); for j >= nd_total the
    block lies in the trailing F*HW-wide statistic region (write the broadcast
    statistic; the final block is a partial edge block and Pallas masks it).
    The input index map clamps to the last data chunk during stat steps, so no
    extra input DMA is issued there.
    """
    j = pl.program_id(1)

    @pl.when(j == 0)
    def _init():
        acc_ref[...] = jnp.zeros_like(acc_ref)

    @pl.when(j < nd_total)
    def _data():
        x = x_ref[...]                                     # (G, M_blk, chunk), input dtype
        o_ref[...] = x                                     # dense pass-through store
        xf = x.astype(jnp.float32)
        mu = jnp.mean(xf, axis=0)                          # (M_blk, chunk)
        var = jnp.mean(jnp.square(xf - mu[None, :, :]), axis=0)
        std = jnp.sqrt(var + 1e-8)                         # (M_blk, chunk)
        # Fold chunk -> 128 with lane-aligned VPU adds (no per-step XLU reduce).
        partial = std[:, 0:128]
        for t in range(1, chunk // 128):
            partial = partial + std[:, t * 128:(t + 1) * 128]
        if F == 1:
            acc_ref[0] += partial
        else:
            f_dyn = j // ndata
            for f in range(F):
                @pl.when(f_dyn == f)
                def _(f=f):
                    acc_ref[f] += partial

    @pl.when(j >= nd_total)
    def _stat():
        if F == 1:
            stat0 = jnp.sum(acc_ref[0], axis=-1, keepdims=True) * inv_count   # (M_blk,1)
            y = jnp.broadcast_to(stat0, (M_blk, chunk))
        else:
            lane0 = (j - nd_total) * chunk
            lane = lax.broadcasted_iota(jnp.int32, (M_blk, chunk), 1) + lane0
            f_of_lane = jnp.clip(lane // HW, 0, F - 1)     # OOB lanes masked on store
            y = jnp.zeros((M_blk, chunk), jnp.float32)
            for f in range(F):
                stat_f = jnp.sum(acc_ref[f], axis=-1, keepdims=True) * inv_count
                y = jnp.where(f_of_lane == f, stat_f, y)
        o_ref[...] = jnp.broadcast_to(y[None, :, :],
                                      (G, M_blk, chunk)).astype(o_ref.dtype)


def _mbstd_small_kernel(x_ref, o_ref, *, G, Mb, C, F, c_per, HW):
    """Fallback for c_per*HW not a multiple of 128 (tiny tensors), tiled over M."""
    x = x_ref[...]                                         # (G, Mb, C*HW), input dtype
    o_ref[:, :, 0:C * HW] = x                              # pass-through (no upcast)
    xf = x.astype(jnp.float32)
    base = C * HW
    for f in range(F):                                     # F is small (default 1)
        blk = xf[:, :, f * c_per * HW:(f + 1) * c_per * HW]
        mu = jnp.mean(blk, axis=0)                         # (Mb, c_per*HW)
        var = jnp.mean(jnp.square(blk - mu[None, :, :]), axis=0)
        std = jnp.sqrt(var + 1e-8)
        stat = jnp.mean(std, axis=-1, keepdims=True)       # (Mb, 1)
        o_ref[:, :, base + f * HW:base + (f + 1) * HW] = jnp.broadcast_to(
            stat[None, :, :], (G, Mb, HW)).astype(o_ref.dtype)


# ---------------------------------------------------------------------------
# Wrapper
# ---------------------------------------------------------------------------

def minibatch_std_layer(x, group_size, n_chan=1):
    """JAX/Pallas equivalent of MinibatchStdLayer.forward.  x: (N, C, H, W)."""
    N, C, H, W = x.shape
    G = N if group_size is None else min(int(group_size), N)
    F = int(n_chan)
    assert N % G == 0, "batch must be divisible by the group size"
    assert C % F == 0, "channels must be divisible by n_chan"
    M = N // G
    c_per = C // F
    HW = H * W
    Lf = c_per * HW                      # per-feature lane width
    L_in = C * HW
    L_out = (C + F) * HW
    dtype = x.dtype
    dsize = dtype.itemsize
    vmem_limit = _vmem_limit_bytes()

    x3 = x.reshape(G, M, L_in)           # free: contiguous leading/trailing reshape

    if Lf % 128 == 0:
        # ---------------- tiled, pipelined path ----------------
        M_blk, chunk = _pick_tiled_params(G, M, Lf, dsize, vmem_limit)
        M_tiles = M // M_blk
        ndata = Lf // chunk               # data chunks per feature
        nd_total = F * ndata              # total data chunks (= L_in // chunk)
        nstat = (F * HW + chunk - 1) // chunk   # trailing stat blocks (usually 1)

        def in_map(mt, j):
            # During stat steps stay on the last data chunk -> no extra DMA.
            return (0, mt, jnp.minimum(j, nd_total - 1))

        def out_map(mt, j):
            return (0, mt, j)             # last block is a masked partial edge block

        kernel = functools.partial(
            _mbstd_tiled_kernel, G=G, M_blk=M_blk, chunk=chunk, ndata=ndata,
            nd_total=nd_total, HW=HW, F=F, inv_count=1.0 / float(Lf))

        out3 = pl.pallas_call(
            kernel,
            out_shape=jax.ShapeDtypeStruct((G, M, L_out), dtype),
            grid_spec=pltpu.PrefetchScalarGridSpec(
                num_scalar_prefetch=0,
                grid=(M_tiles, nd_total + nstat),
                in_specs=[pl.BlockSpec((G, M_blk, chunk), in_map)],
                out_specs=pl.BlockSpec((G, M_blk, chunk), out_map),
                scratch_shapes=[pltpu.VMEM((F, M_blk, 128), jnp.float32)],
            ),
            compiler_params=pltpu.CompilerParams(
                dimension_semantics=("parallel", "arbitrary"),
                vmem_limit_bytes=vmem_limit),
        )(x3)
    else:
        # ------------- small / unaligned fallback (e.g. 4x4 stage) -------------
        budget = vmem_limit // 2

        def fb_bytes(d):
            # in/out double-buffered blocks + ~2x input block of f32 temporaries
            return G * d * (2 * (L_in + L_out) * dsize + 8 * L_in)

        cands = [d for d in range(M, 0, -1)
                 if M % d == 0 and (d % 8 == 0 or d == M)]
        M_blk = next((d for d in cands if fb_bytes(d) <= budget), None)
        if M_blk is None:
            # TODO(synk): tile the non-128-aligned path along the lane axis too.
            raise ValueError("MinibatchStdLayer fallback block exceeds the VMEM budget")
        M_tiles = M // M_blk

        kernel = functools.partial(
            _mbstd_small_kernel, G=G, Mb=M_blk, C=C, F=F, c_per=c_per, HW=HW)
        out3 = pl.pallas_call(
            kernel,
            out_shape=jax.ShapeDtypeStruct((G, M, L_out), dtype),
            grid_spec=pltpu.PrefetchScalarGridSpec(
                num_scalar_prefetch=0,
                grid=(M_tiles,),
                in_specs=[pl.BlockSpec((G, M_blk, L_in), lambda mt: (0, mt, 0))],
                out_specs=pl.BlockSpec((G, M_blk, L_out), lambda mt: (0, mt, 0)),
            ),
            compiler_params=pltpu.CompilerParams(
                dimension_semantics=("parallel",),
                vmem_limit_bytes=vmem_limit),
        )(x3)

    return out3.reshape(N, C + F, H, W)


# ---------------------------------------------------------------------------
# Pure-JAX reference (mirrors the PyTorch forward)
# ---------------------------------------------------------------------------

def _reference(x, group_size, n_chan=1):
    N, C, H, W = x.shape
    G = N if group_size is None else min(int(group_size), N)
    F = int(n_chan)
    c = C // F
    xf = x.astype(jnp.float32)
    y = xf.reshape(G, -1, F, c, H, W)
    y = y - y.mean(axis=0)
    y = jnp.mean(jnp.square(y), axis=0)
    y = jnp.sqrt(y + 1e-8)
    y = y.mean(axis=(2, 3, 4))            # (M, F)
    y = y.reshape(-1, F, 1, 1)
    y = jnp.tile(y, (G, 1, H, W))         # (N, F, H, W)
    return jnp.concatenate([xf, y], axis=1)


if __name__ == "__main__":
    key = jax.random.PRNGKey(0)

    # 1) f32, 16x16 spatial, group_size=2 -> tiled path.
    x = jax.random.normal(key, (4, 4, 16, 16), dtype=jnp.float32)
    out = jax.block_until_ready(minibatch_std_layer(x, group_size=2, n_chan=1))
    ref = _reference(x, 2, 1)
    assert out.shape == (4, 5, 16, 16) and out.dtype == jnp.float32
    assert jnp.allclose(out, ref, atol=1e-5, rtol=1e-5), "tiled path mismatch"

    # 2) group_size=None (G == N, M == 1), tiled path.
    out = jax.block_until_ready(minibatch_std_layer(x, group_size=None, n_chan=1))
    ref = _reference(x, None, 1)
    assert jnp.allclose(out, ref, atol=1e-5, rtol=1e-5), "group_size=None mismatch"

    # 3) tiled path with n_chan=2 (partial trailing stat block spans both features).
    x2 = jax.random.normal(jax.random.PRNGKey(2), (8, 8, 16, 16), dtype=jnp.float32)
    out = jax.block_until_ready(minibatch_std_layer(x2, group_size=4, n_chan=2))
    ref = _reference(x2, 4, 2)
    assert out.shape == (8, 10, 16, 16)
    assert jnp.allclose(out, ref, atol=1e-5, rtol=1e-5), "n_chan=2 tiled mismatch"

    # 4) multi-chunk accumulation (Lf > chunk cap) with M_tiles >= 2.
    x4 = jax.random.normal(jax.random.PRNGKey(3), (32, 72, 16, 16), dtype=jnp.float32)
    out = jax.block_until_ready(minibatch_std_layer(x4, group_size=2, n_chan=1))
    ref = _reference(x4, 2, 1)
    assert out.shape == (32, 73, 16, 16)
    assert jnp.allclose(out, ref, atol=1e-5, rtol=1e-5), "multi-chunk mismatch"

    # 5) small spatial (4x4 stage) + n_chan=2 -> fallback path.
    x_small = jax.random.normal(jax.random.PRNGKey(1), (4, 8, 4, 4), dtype=jnp.float32)
    out = jax.block_until_ready(minibatch_std_layer(x_small, group_size=2, n_chan=2))
    ref = _reference(x_small, 2, 2)
    assert out.shape == (4, 10, 4, 4)
    assert jnp.allclose(out, ref, atol=1e-5, rtol=1e-5), "fallback path mismatch"

    # 6) bf16 input: storage dtype preserved, stats computed in f32.
    x_bf16 = x.astype(jnp.bfloat16)
    out = jax.block_until_ready(minibatch_std_layer(x_bf16, group_size=2, n_chan=1))
    assert out.dtype == jnp.bfloat16
    ref = _reference(x_bf16, 2, 1)
    assert jnp.allclose(out.astype(jnp.float32), ref, atol=1e-2, rtol=1e-2), "bf16 mismatch"

    print("KERNEL_OK")
</pallas_src>

<mosaic_0001>
module attributes {stable_mosaic.version = 11 : i64} {
  func.func @_mbstd_tiled_kernel(%arg0: i32, %arg1: i32, %arg2: memref<2x2x1024xf32, #tpu.memory_space<vmem>>, %arg3: memref<2x2x1024xf32, #tpu.memory_space<vmem>>, %arg4: memref<1x2x128xf32, #tpu.memory_space<vmem>>) attributes {dimension_semantics = [#tpu.dimension_semantics<parallel>, #tpu.dimension_semantics<arbitrary>], iteration_bounds = array<i64: 1, 2>, scalar_prefetch = 0 : i64, scratch_operands = 1 : i64, tpu.core_type = #tpu.core_type<tc>, window_params = [{transform_indices = @transform_0, window_bounds = array<i64: 2, 2, 1024>}, {transform_indices = @transform_1, window_bounds = array<i64: 2, 2, 1024>}]} {
    %c0_i32 = arith.constant 0 : i32
    %0 = arith.cmpi eq, %arg1, %c0_i32 : i32
    %1 = arith.extui %0 : i1 to i32
    %c0_i32_0 = arith.constant 0 : i32
    %2 = arith.cmpi ne, %1, %c0_i32_0 : i32
    scf.if %2 {
      %cst = arith.constant 0.000000e+00 : f32
      %9 = vector.broadcast %cst : f32 to vector<1x2x128xf32>
      %c0 = arith.constant 0 : index
      %c0_4 = arith.constant 0 : index
      %c0_5 = arith.constant 0 : index
      %10 = vector.load %arg4[%c0, %c0_4, %c0_5] : memref<1x2x128xf32, #tpu.memory_space<vmem>>, vector<1x2x128xf32>
      tpu.vector_store %arg4[%c0, %c0_4, %c0_5], %9 {strides = array<i32>} : memref<1x2x128xf32, #tpu.memory_space<vmem>>, vector<1x2x128xf32>,
    } else {
    }
    %c1_i32 = arith.constant 1 : i32
    %3 = arith.cmpi slt, %arg1, %c1_i32 : i32
    %4 = arith.extui %3 : i1 to i32
    %c0_i32_1 = arith.constant 0 : i32
    %5 = arith.cmpi ne, %4, %c0_i32_1 : i32
    scf.if %5 {
      %c0 = arith.constant 0 : index
      %c0_4 = arith.constant 0 : index
      %c0_5 = arith.constant 0 : index
      %9 = vector.load %arg2[%c0, %c0_4, %c0_5] : memref<2x2x1024xf32, #tpu.memory_space<vmem>>, vector<2x2x1024xf32>
      %c0_6 = arith.constant 0 : index
      %c0_7 = arith.constant 0 : index
      %c0_8 = arith.constant 0 : index
      %10 = vector.load %arg3[%c0_6, %c0_7, %c0_8] : memref<2x2x1024xf32, #tpu.memory_space<vmem>>, vector<2x2x1024xf32>
      tpu.vector_store %arg3[%c0_6, %c0_7, %c0_8], %9 {strides = array<i32>} : memref<2x2x1024xf32, #tpu.memory_space<vmem>>, vector<2x2x1024xf32>,
      %cst = arith.constant dense<0.000000e+00> : vector<2x1024xf32>
      %11 = vector.multi_reduction <add>, %9, %cst [0] : vector<2x2x1024xf32> to vector<2x1024xf32>
      %cst_9 = arith.constant 2.000000e+00 : f32
      %12 = vector.broadcast %cst_9 : f32 to vector<2x1024xf32>
      %13 = arith.divf %11, %12 : vector<2x1024xf32>
      %14 = vector.shape_cast %13 : vector<2x1024xf32> to vector<1x2x1024xf32>
      %15 = vector.broadcast %14 : vector<1x2x1024xf32> to vector<2x2x1024xf32>
      %16 = arith.subf %9, %15 : vector<2x2x1024xf32>
      %17 = arith.mulf %16, %16 : vector<2x2x1024xf32>
      %cst_10 = arith.constant dense<0.000000e+00> : vector<2x1024xf32>
      %18 = vector.multi_reduction <add>, %17, %cst_10 [0] : vector<2x2x1024xf32> to vector<2x1024xf32>
      %cst_11 = arith.constant 2.000000e+00 : f32
      %19 = vector.broadcast %cst_11 : f32 to vector<2x1024xf32>
      %20 = arith.divf %18, %19 : vector<2x1024xf32>
      %cst_12 = arith.constant 9.99999993E-9 : f32
      %21 = vector.broadcast %cst_12 : f32 to vector<2x1024xf32>
      %22 = arith.addf %20, %21 : vector<2x1024xf32>
      %23 = math.sqrt %22 : vector<2x1024xf32>
      %24 = vector.extract_strided_slice %23 {offsets = [0, 0], sizes = [2, 128], strides = [1, 1]} : vector<2x1024xf32> to vector<2x128xf32>
      %25 = vector.extract_strided_slice %23 {offsets = [0, 128], sizes = [2, 128], strides = [1, 1]} : vector<2x1024xf32> to vector<2x128xf32>
      %26 = arith.addf %24, %25 : vector<2x128xf32>
      %27 = vector.extract_strided_slice %23 {offsets = [0, 256], sizes = [2, 128], strides = [1, 1]} : vector<2x1024xf32> to vector<2x128xf32>
      %28 = arith.addf %26, %27 : vector<2x128xf32>
      %29 = vector.extract_strided_slice %23 {offsets = [0, 384], sizes = [2, 128], strides = [1, 1]} : vector<2x1024xf32> to vector<2x128xf32>
      %30 = arith.addf %28, %29 : vector<2x128xf32>
      %31 = vector.extract_strided_slice %23 {offsets = [0, 512], sizes = [2, 128], strides = [1, 1]} : vector<2x1024xf32> to vector<2x128xf32>
      %32 = arith.addf %30, %31 : vector<2x128xf32>
      %33 = vector.extract_strided_slice %23 {offsets = [0, 640], sizes = [2, 128], strides = [1, 1]} : vector<2x1024xf32> to vector<2x128xf32>
      %34 = arith.addf %32, %33 : vector<2x128xf32>
      %35 = vector.extract_strided_slice %23 {offsets = [0, 768], sizes = [2, 128], strides = [1, 1]} : vector<2x1024xf32> to vector<2x128xf32>
      %36 = arith.addf %34, %35 : vector<2x128xf32>
      %37 = vector.extract_strided_slice %23 {offsets = [0, 896], sizes = [2, 128], strides = [1, 1]} : vector<2x1024xf32> to vector<2x128xf32>
      %38 = arith.addf %36, %37 : vector<2x128xf32>
      %c0_13 = arith.constant 0 : index
      %c0_14 = arith.constant 0 : index
      %c0_15 = arith.constant 0 : index
      %39 = vector.load %arg4[%c0_13, %c0_14, %c0_15] : memref<1x2x128xf32, #tpu.memory_space<vmem>>, vector<1x2x128xf32>
      %40 = vector.shape_cast %39 : vector<1x2x128xf32> to vector<2x128xf32>
      %41 = arith.addf %40, %38 : vector<2x128xf32>
      %c0_16 = arith.constant 0 : index
      %c0_17 = arith.constant 0 : index
      %c0_18 = arith.constant 0 : index
      %42 = vector.load %arg4[%c0_16, %c0_17, %c0_18] : memref<1x2x128xf32, #tpu.memory_space<vmem>>, vector<1x2x128xf32>
      %43 = vector.shape_cast %42 : vector<1x2x128xf32> to vector<2x128xf32>
      %44 = vector.shape_cast %41 : vector<2x128xf32> to vector<1x2x128xf32>
      tpu.vector_store %arg4[%c0_16, %c0_17, %c0_18], %44 {strides = array<i32>} : memref<1x2x128xf32, #tpu.memory_space<vmem>>, vector<1x2x128xf32>,
    } else {
    }
    %c1_i32_2 = arith.constant 1 : i32
    %6 = arith.cmpi sge, %arg1, %c1_i32_2 : i32
    %7 = arith.extui %6 : i1 to i32
    %c0_i32_3 = arith.constant 0 : i32
    %8 = arith.cmpi ne, %7, %c0_i32_3 : i32
    scf.if %8 {
      %c0 = arith.constant 0 : index
      %c0_4 = arith.constant 0 : index
      %c0_5 = arith.constant 0 : index
      %9 = vector.load %arg4[%c0, %c0_4, %c0_5] : memref<1x2x128xf32, #tpu.memory_space<vmem>>, vector<1x2x128xf32>
      %10 = vector.shape_cast %9 : vector<1x2x128xf32> to vector<2x128xf32>
      %cst = arith.constant dense<0.000000e+00> : vector<2xf32>
      %11 = vector.multi_reduction <add>, %10, %cst [1] : vector<2x128xf32> to vector<2xf32>
      %12 = vector.shape_cast %11 : vector<2xf32> to vector<2x1xf32>
      %cst_6 = arith.constant 9.765625E-4 : f32
      %13 = vector.broadcast %cst_6 : f32 to vector<2x1xf32>
      %14 = arith.mulf %12, %13 : vector<2x1xf32>
      %15 = vector.shape_cast %14 : vector<2x1xf32> to vector<2x1xf32>
      %16 = vector.broadcast %15 : vector<2x1xf32> to vector<2x1024xf32>
      %17 = vector.shape_cast %16 : vector<2x1024xf32> to vector<1x2x1024xf32>
      %18 = vector.shape_cast %17 : vector<1x2x1024xf32> to vector<1x2x1024xf32>
      %19 = vector.broadcast %18 : vector<1x2x1024xf32> to vector<2x2x1024xf32>
      %c0_7 = arith.constant 0 : index
      %c0_8 = arith.constant 0 : index
      %c0_9 = arith.constant 0 : index
      %20 = vector.load %arg3[%c0_7, %c0_8, %c0_9] : memref<2x2x1024xf32, #tpu.memory_space<vmem>>, vector<2x2x1024xf32>
      tpu.vector_store %arg3[%c0_7, %c0_8, %c0_9], %19 {strides = array<i32>} : memref<2x2x1024xf32, #tpu.memory_space<vmem>>, vector<2x2x1024xf32>,
    } else {
    }
    return
  }
  func.func @transform_0(%arg0: i32, %arg1: i32) -> (i32, i32, i32) {
    %c0_i32 = arith.constant 0 : i32
    %0 = arith.minsi %arg1, %c0_i32 : i32
    %c0_i32_0 = arith.constant 0 : i32
    %c0_i32_1 = arith.constant 0 : i32
    return %c0_i32_0, %arg0, %0 : i32, i32, i32
  }
  func.func @transform_1(%arg0: i32, %arg1: i32) -> (i32, i32, i32) {
    %c0_i32 = arith.constant 0 : i32
    %c0_i32_0 = arith.constant 0 : i32
    return %c0_i32, %arg0, %arg1 : i32, i32, i32
  }
}

</mosaic_0001>

<bundles_post_ra>
// kernel: tpu_custom_call.1
= control target key start
LH: loop header
LB: loop body
LE: loop exit
PB: predicated region body
PF: predicated region fallthrough
CT: control target
= control target key end

     0   :  { %6 = vsyncpa [#allocation4], 0  ;;  %s1295_s0 = inlined_call_operand.hbm [shape: f32[2,2,1024], index: 0, kind: input, shape index: {}]   ;;  %s1296_s1 = inlined_call_operand.hbm [shape: f32[2,2,1280], index: 1, kind: output, shape index: {}]  }
   0x1   :  { %8 = vsyncpa [#allocation4 + $0x1], 0 }
   0x2   :  { %9 = vsyncpa [#allocation5], 0 }
   0x3   :  { %11 = vsyncpa [#allocation5 + $0x1], 0  ;;  %s978_s6 = smov 0   ;;  %s980_s7 = smov 0  }
   0x4   :  { %s982_s8 = smov 0   ;;  %s984_s9 = smov 0  }
   0x5   :  { %s986_s10 = smov 0   ;;  %s988_s11 = smov 0  }
   0x6   :  { %s990_s12 = smov 0   ;;  %s992_s13 = smov 0  }
   0x7 LB: > { %s685_s14 = sadd.s32 4294967295, %s957_s13   ;;  %s686_s15 = sadd.s32 4294967294, %s957_s13   ;;  %s957_s13 = sphi %s992_s13, %s17_s13   ;;  %s953_s12 = sphi %s990_s12, %s1314_s12   ;;  %s949_s11 = sphi %s988_s11, %s1313_s11   ;;  %s945_s10 = sphi %s986_s10, %s1285_s10   ;;  %s941_s9 = sphi %s984_s9, %s1312_s9   ;;  %s937_s8 = sphi %s982_s8, %s1311_s8   ;;  %s933_s7 = sphi %s980_s7, %s1310_s7   ;;  %s929_s6 = sphi %s978_s6, %s1309_s6  }
   0x8   : > { %s26_s16 = sadd.s32 1, %s953_s12  ;;  %p926_p1 = scmp.ne.s32.totalorder %s945_s10, 0 }
   0x9   : > { %p27_p0 = scmp.ge.s32.totalorder %s26_s16, 2  ;;  %p50_p2 = scmp.eq.s32.totalorder %s957_s13, 0 }
   0xa   : > { %p55_p3 = scmp.ne.s32.totalorder %s945_s10, %s941_s9  ;;  %p56_p5 = scmp.eq.s32.totalorder %s685_s14, 0 }
   0xb   : > { %s1316_s16 = smov (%p27_p0, %s26_s16), 0  ;;  %p1024_p4 = por %p926_p1, %p50_p2 }
   0xc   : > { %p1028_p6 = por %p56_p5, %p55_p3  ;;  %s66_s19 = ssub.s32 %s953_s12, %s1316_s16 }
   0xd   : > { %p68_p7 = scmp.eq.s32.totalorder %s66_s19, 0  ;;  %s70_s20 = sadd.s32 1, %s937_s8 }
   0xe   : > { %s1300_s18 = scalar_select %p1028_p6, 1, 0 }
   0xf   : > { %s1036_s21 = scalar_select %p68_p7, %s937_s8, %s70_s20  }
  0x10   : > { %p80_p8 = scmp.ne.s32.totalorder %s937_s8, %s933_s7  ;;  %p81_p9 = scmp.eq.s32.totalorder %s685_s14, 1 }
  0x11   : > { %p86_p10 = scmp.ne.s32.totalorder %s933_s7, %s929_s6  ;;  %p87_p11 = scmp.eq.s32.totalorder %s686_s15, 1 }
  0x12   : > { %p1042_p12 = por %p81_p9, %p80_p8  ;;  %p723_p1 = scmp.lt.s32.totalorder %s957_s13, 2 }
  0x13   : > { %p1047_p0 = por %p87_p11, %p86_p10  ;;  %s959_s24 = smov [#allocation3]  }
  0x14   : > { %s1301_s22 = scalar_select %p1042_p12, 1, 0 }
  0x15   : > { %s1302_s23 = scalar_select %p1047_p0, 1, 0 }
  0x16   : > { %s122_s25 = sshll.u32 %s959_s24, 4  ;;  %p1054_p2 = pnand %p723_p1, %p1024_p4  ;;  %s123_s25 = int_to_ptr.vmem [resolvable:$true] %s122_s25 }
  0x17   : > { %s824_s29 = scalar_lea.hbm %s1295_s0, 512 }
  0x18   : > { %s1303_s26 = scalar_select %p1054_p2, 1, 0 }
  0x19   : > { %p825_p3 = scmp.ne.s32.totalorder %s1295_s0, %s824_s29  ;;  %p826_p5 = pneg %p1054_p2 }
  0x1a   : > { %p831_p9 = scmp.lt.u32.totalorder %s824_s29, %s824_s29  ;;  %p833_p4 = scmp.lt.u32.totalorder %s824_s29, %s1295_s0 }
  0x1b   : > { %p827_p7 = pnand %p826_p5, %p825_p3 }
  0x1c   : > { %p834_p10 = por %p833_p4, %p831_p9 }
  0x1d   : > { %p828_p8 = pneg %p827_p7 }
  0x1f   : > { %p835_p11 = pnand %p834_p10, %p828_p8 }
  0x21   : > { %838 = shalt.err (!%p835_p11)
}
  0x22   : > { %s839_s5 = scalar_lea.vmem %s123_s25, 512  ;;  %s846_s9 = scalar_lea.vmem %s123_s25, 1024 }
  0x23   : > { %p840_p1 = scmp.ne.s32.totalorder %s123_s25, %s839_s5  ;;  %p847_p12 = scmp.lt.s32.totalorder %s123_s25, %s123_s25 }
  0x24   : > { %p848_p6 = scmp.lt.s32.totalorder %s846_s9, %s839_s5 }
  0x25   : > { %p842_p13 = pnand %p840_p1, %p826_p5 }
  0x26   : > { %p849_p2 = por %p848_p6, %p847_p12 }
  0x27   : > { %p843_p0 = pneg %p842_p13 }
  0x29   : > { %p850_p3 = pnand %p849_p2, %p843_p0 }
  0x2b   : > { %853 = shalt.err (!%p850_p3)
}
  0x2c   : > { %s960_s14 = smov 256   ;;  %s961_s15 = smov 16  }
  0x2d   : > { %p1304_p7 = scmp.ne.s32.totalorder %s1303_s26, 0  ;;  %p692_p8 = scmp.ge.s32.totalorder %s957_s13, 1 }
  0x2e   : > { %p130_p9 = scmp.lt.s32.totalorder %s957_s13, 3 }
  0x2f   : > { %718 = dma.hbm_to_vmem [thread:$0]  (!%p1304_p7), %s1295_s0, 512, %s123_s25, [#allocation4], %s960_s14, %s960_s14, %s961_s15  }
  0x30   : > { %p131_p5 = pnand %p692_p8, %p130_p9 }
  0x31   : > { %s136_s20 = sand.u32 (!%p131_p5), 1, %s945_s10   ;;  %p1305_p6 = scmp.ne.s32.totalorder (!%p131_p5), %s1300_s18, 0 }
  0x32   : > { %134 = sbr.rel (%p131_p5) target bundleno = 335 (0x14f), region = 24  ;;  %s693_s24 = sshll.u32 (!%p131_p5), %s136_s20, 5 }
  0x33   : > { %s137_s27 = scalar_lea.sflag (!%p131_p5), [#allocation4], %s136_s20  ;;  %s140_s28 = scalar_lea.vmem (!%p131_p5), [#allocation3], %s693_s24 }
  0x39   : > { %919 = dma.done.wait (%p1305_p6), %s137_s27, 512  }
  0x3a   : > { %921 = vsyncadd (%p1305_p6), %s137_s27, 4294966784  ;;  %s156_s26 = sand.u32 1, %s933_s7   ;;  %p695_p12 = scmp.ne.s32.totalorder %s949_s11, 0 }
  0x3b   : > { %s694_s25 = sshll.u32 %s156_s26, 5  ;;  %v962_v0 = vmov (!%p695_p12), 0.0  }
  0x3c   : > { %s1084_s29 = scalar_lea.vmem [#allocation6], %s694_s25  ;;  %170 = sbr.rel (%p695_p12) target bundleno = 67 (0x43), region = 32  ;;  %171 = vst [vmem:[#allocation2] sm:$0x3] (!%p695_p12), %v962_v0 }
  0x43 PF: > { %p696_p13 = scmp.ge.s32.totalorder %s949_s11, 1 }
  0x44   : > { %v1088_v1 = vld [vmem:[%s140_s28] sm:$0xff] (!%p696_p13)  ;;  %v192_v2 = vlaneseq (!%p696_p13)  ;;  %v1090_v3 = vld [vmem:[%s140_s28 + $0x8] sm:$0xff] (!%p696_p13)  ;;  %v1092_v4 = vld [vmem:[%s140_s28 + $0x10] sm:$0xff] (!%p696_p13)  ;;  %v963_v5 = vmov (!%p696_p13), 1983009808   ;;  %vm272_vm0 = vcmask (!%p696_p13), 1041408  }
  0x45   : > { %175 = sbr.rel (%p696_p13) target bundleno = 141 (0x8d), region = 36  ;;  %180 = vst [vmem:[%s1084_s29] sm:$0xff] (!%p696_p13), %v1088_v1  ;;  %v190_v6 = vunpack.c.l.s4 (!%p696_p13), %v963_v5  ;;  %181 = vst [vmem:[%s1084_s29 + $0x8] sm:$0xff] (!%p696_p13), %v1090_v3  ;;  %v1100_v7 = vld [vmem:[%s140_s28 + $0x18] sm:$0xff] (!%p696_p13)  ;;  %v188_v9 = vcombine.high (!%p696_p13), %v1088_v1, %v1088_v1  ;;  %v205_v11 = vcombine.high (!%p696_p13), %v1090_v3, %v1090_v3  ;;  %v222_v12 = vcombine.high (!%p696_p13), %v1092_v4, %v1092_v4 }
  0x46   : > { %182 = vst [vmem:[%s1084_s29 + $0x10] sm:$0xff] (!%p696_p13), %v1092_v4  ;;  %v193_v8 = vshrl.u32 (!%p696_p13), %v192_v2, 7  ;;  %183 = vst [vmem:[%s1084_s29 + $0x18] sm:$0xff] (!%p696_p13), %v1100_v7  ;;  %v239_v13 = vcombine.high (!%p696_p13), %v1100_v7, %v1100_v7 }
  0x47   : > { %v191_v10 = vunpack.c.0.s8 (!%p696_p13), %v190_v6 }
  0x49   : > { %v1112_v14 = vsub.s32 (!%p696_p13), %v191_v10, %v193_v8 }
  0x4b   : > { %v195_v15 = vrot.slane (!%p696_p13), %v1088_v1, %v1112_v14  ;;  %v202_v16 = vrot.slane (!%p696_p13), %v188_v9, %v1112_v14  ;;  %v212_v17 = vrot.slane (!%p696_p13), %v1090_v3, %v1112_v14  ;;  %v219_v18 = vrot.slane (!%p696_p13), %v205_v11, %v1112_v14 }
  0x4c   : > { %v229_v19 = vrot.slane %v1092_v4, %v1112_v14  ;;  %v236_v20 = vrot.slane %v222_v12, %v1112_v14  ;;  %v246_v21 = vrot.slane %v1100_v7, %v1112_v14  ;;  %v253_v22 = vrot.slane %v239_v13, %v1112_v14 }
  0x4d   : > { %v203_v23 = vcombine.high %v195_v15, %v195_v15  ;;  %v204_v24 = vcombine.high %v202_v16, %v202_v16  ;;  %v273_v25 = vsel %vm272_vm0, %v195_v15, 0.0  ;;  %v279_v26 = vsel %vm272_vm0, %v202_v16, 0.0 }
  0x4e   : > { %v220_v27 = vcombine.high %v212_v17, %v212_v17  ;;  %v221_v28 = vcombine.high %v219_v18, %v219_v18  ;;  %v285_v29 = vsel %vm272_vm0, %v212_v17, 0.0  ;;  %v291_v30 = vsel %vm272_vm0, %v219_v18, 0.0 }
  0x4f   : > { %v276_v31 = vsel %vm272_vm0, %v203_v23, 0.0  ;;  %v282_v32 = vsel %vm272_vm0, %v204_v24, 0.0  ;;  %v237_v33 = vcombine.high %v229_v19, %v229_v19  ;;  %v238_v34 = vcombine.high %v236_v20, %v236_v20 }
  0x50   : > { %v288_v35 = vsel %vm272_vm0, %v220_v27, 0.0  ;;  %v294_v36 = vsel %vm272_vm0, %v221_v28, 0.0  ;;  %v274_v37 = vsel %vm272_vm0, %v229_v19, 0.0  ;;  %v280_v38 = vsel %vm272_vm0, %v236_v20, 0.0 }
  0x51   : > { %v275_v39 = vadd.f32 %v274_v37, %v273_v25  ;;  %v277_v40 = vsel %vm272_vm0, %v237_v33, 0.0  ;;  %v281_v41 = vadd.f32 %v280_v38, %v279_v26  ;;  %v283_v42 = vsel %vm272_vm0, %v238_v34, 0.0 }
  0x52   : > { %v278_v43 = vadd.f32 %v277_v40, %v276_v31  ;;  %v284_v44 = vadd.f32 %v283_v42, %v282_v32  ;;  %v254_v45 = vcombine.high %v246_v21, %v246_v21  ;;  %v255_v46 = vcombine.high %v253_v22, %v253_v22 }
  0x53   : > { %v298_v47 = vmul.f32 0.5, %v275_v39  ;;  %v300_v48 = vmul.f32 0.5, %v281_v41  ;;  %v286_v49 = vsel %vm272_vm0, %v246_v21, 0.0  ;;  %v292_v50 = vsel %vm272_vm0, %v253_v22, 0.0 }
  0x54   : > { %v299_v51 = vmul.f32 0.5, %v278_v43  ;;  %v301_v52 = vmul.f32 0.5, %v284_v44  ;;  %v287_v53 = vadd.f32 %v286_v49, %v285_v29  ;;  %v289_v54 = vsel %vm272_vm0, %v254_v45, 0.0 }
  0x55   : > { %v290_v55 = vadd.f32 %v289_v54, %v288_v35  ;;  %v293_v56 = vadd.f32 %v292_v50, %v291_v30  ;;  %v295_v57 = vsel %vm272_vm0, %v255_v46, 0.0 }
  0x56   : > { %v314_v58 = vcombine.low %v298_v47, %v299_v51  ;;  %v315_v59 = vcombine.low %v300_v48, %v301_v52  ;;  %v296_v60 = vadd.f32 %v295_v57, %v294_v36  ;;  %v302_v61 = vmul.f32 0.5, %v287_v53 }
  0x57   : > { %v303_v62 = vmul.f32 0.5, %v290_v55  ;;  %v304_v63 = vmul.f32 0.5, %v293_v56 }
  0x58   : > { %v322_v0 = vrot.slane %v314_v58, %v1112_v14  ;;  %v329_v2 = vrot.slane %v315_v59, %v1112_v14  ;;  %v305_v5 = vmul.f32 0.5, %v296_v60 }
  0x59   : > { %v331_v6 = vcombine.low %v302_v61, %v303_v62 }
  0x5a   : > { %v330_v8 = vcombine.low %v322_v0, %v329_v2  ;;  %v332_v9 = vcombine.low %v304_v63, %v305_v5 }
  0x5b   : > { %v339_v10 = vrot.slane %v331_v6, %v1112_v14 }
  0x5c   : > { %v350_v11 = vsub.f32 %v1088_v1, %v330_v8  ;;  %v352_v12 = vsub.f32 %v1092_v4, %v330_v8  ;;  %v346_v13 = vrot.slane %v332_v9, %v1112_v14 }
  0x5e   : > { %v354_v15 = vmul.f32 %v350_v11, %v350_v11  ;;  %v356_v16 = vmul.f32 %v352_v12, %v352_v12  ;;  %v347_v17 = vcombine.low %v339_v10, %v346_v13 }
  0x60   : > { %v362_v18 = vcombine.high %v354_v15, %v354_v15  ;;  %v369_v19 = vrot.slane %v354_v15, %v1112_v14  ;;  %v396_v20 = vcombine.high %v356_v16, %v356_v16  ;;  %v403_v21 = vrot.slane %v356_v16, %v1112_v14 }
  0x61   : > { %v351_v22 = vsub.f32 %v1090_v3, %v347_v17  ;;  %v353_v23 = vsub.f32 %v1100_v7, %v347_v17 }
  0x62   : > { %v376_v24 = vrot.slane %v362_v18, %v1112_v14  ;;  %v377_v1 = vcombine.high %v369_v19, %v369_v19  ;;  %v410_v4 = vrot.slane %v396_v20, %v1112_v14  ;;  %v411_v25 = vcombine.high %v403_v21, %v403_v21 }
  0x63   : > { %v446_v26 = vsel %vm272_vm0, %v369_v19, 0.0  ;;  %v447_v27 = vsel %vm272_vm0, %v403_v21, 0.0  ;;  %v355_v28 = vmul.f32 %v351_v22, %v351_v22  ;;  %v357_v29 = vmul.f32 %v353_v23, %v353_v23 }
  0x64   : > { %v378_v30 = vcombine.high %v376_v24, %v376_v24  ;;  %v412_v31 = vcombine.high %v410_v4, %v410_v4  ;;  %v448_v32 = vadd.f32 %v447_v27, %v446_v26  ;;  %v449_v33 = vsel %vm272_vm0, %v377_v1, 0.0 }
  0x65   : > { %v450_v3 = vsel %vm272_vm0, %v411_v25, 0.0  ;;  %v452_v7 = vsel %vm272_vm0, %v376_v24, 0.0  ;;  %v453_v34 = vsel %vm272_vm0, %v410_v4, 0.0  ;;  %v379_v35 = vcombine.high %v355_v28, %v355_v28 }
  0x66   : > { %v451_v36 = vadd.f32 %v450_v3, %v449_v33  ;;  %v454_v37 = vadd.f32 %v453_v34, %v452_v7  ;;  %v455_v38 = vsel %vm272_vm0, %v378_v30, 0.0  ;;  %v456_v39 = vsel %vm272_vm0, %v412_v31, 0.0 }
  0x67   : > { %v457_v40 = vadd.f32 %v456_v39, %v455_v38  ;;  %v470_v41 = vmul.f32 0.5, %v448_v32  ;;  %v386_v42 = vrot.slane %v355_v28, %v1112_v14  ;;  %v393_v43 = vrot.slane %v379_v35, %v1112_v14 }
  0x68   : > { %v471_v44 = vmul.f32 0.5, %v451_v36  ;;  %v472_v45 = vmul.f32 0.5, %v454_v37  ;;  %v413_v46 = vcombine.high %v357_v29, %v357_v29  ;;  %v420_v47 = vrot.slane %v357_v29, %v1112_v14 }
  0x69   : > { %v478_v48 = vadd.f32 1e-08, %v470_v41  ;;  %v394_v49 = vcombine.high %v386_v42, %v386_v42  ;;  %v395_v50 = vcombine.high %v393_v43, %v393_v43  ;;  %v473_v51 = vmul.f32 0.5, %v457_v40 }
  0x6a   : > { %v479_v52 = vadd.f32 1e-08, %v471_v44  ;;  %v427_v53 = vrot.slane %v413_v46, %v1112_v14  ;;  %v428_v54 = vcombine.high %v420_v47, %v420_v47  ;;  %v1166_v55 = vadd.f32 1e-08, %v472_v45 }
  0x6b   : > { %808 = vrsqrt.f32 %v478_v48  ;;  %v458_v56 = vsel %vm272_vm0, %v386_v42, 0.0  ;;  %v459_v57 = vsel %vm272_vm0, %v420_v47, 0.0  ;;  %v461_v60 = vsel %vm272_vm0, %v394_v49, 0.0 }
  0x6c   : > { %810 = vrsqrt.f32 %v479_v52  ;;  %v429_v58 = vcombine.high %v427_v53, %v427_v53  ;;  %v460_v59 = vadd.f32 %v459_v57, %v458_v56  ;;  %v462_v61 = vsel %vm272_vm0, %v428_v54, 0.0 }
  0x6d   : > { %v464_v62 = vsel %vm272_vm0, %v393_v43, 0.0  ;;  %v465_v63 = vsel %vm272_vm0, %v427_v53, 0.0  ;;  %v467_v14 = vsel %vm272_vm0, %v395_v50, 0.0  ;;  %v463_v0 = vadd.f32 %v462_v61, %v461_v60  ;;  %v549_v60 = vld [vmem:[#allocation2] sm:$0x3] }
  0x6e   : > { %v466_v2 = vadd.f32 %v465_v63, %v464_v62  ;;  %v468_v5 = vsel %vm272_vm0, %v429_v58, 0.0  ;;  %v474_v6 = vmul.f32 0.5, %v460_v59  ;;  %v481_v8 = vadd.f32 1e-08, %v473_v51 }
  0x6f   : > { %v469_v9 = vadd.f32 %v468_v5, %v467_v14  ;;  %v475_v10 = vmul.f32 0.5, %v463_v0  ;;  %812 = vrsqrt.f32 %v1166_v55  ;;  %vm488_vm1 = vcmp.eq.f32.partialorder %v478_v48, inf }
  0x70   : > { %v476_v11 = vmul.f32 0.5, %v466_v2  ;;  %v482_v12 = vadd.f32 1e-08, %v474_v6  ;;  %814 = vrsqrt.f32 %v481_v8  ;;  %vm490_vm2 = vcmp.eq.f32.partialorder %v478_v48, 0.0 }
  0x71   : > { %v477_v13 = vmul.f32 0.5, %v469_v9  ;;  %v483_v15 = vadd.f32 1e-08, %v475_v10  ;;  %v491_v19 = vand.u32 2147483648, %v478_v48  ;;  %vm495_vm3 = vcmp.eq.f32.partialorder %v479_v52, inf }
  0x72   : > { %v1177_v16 = vadd.f32 1e-08, %v476_v11  ;;  %816 = vrsqrt.f32 %v482_v12  ;;  %v498_v22 = vand.u32 2147483648, %v479_v52  ;;  %vm497_vm4 = vcmp.eq.f32.partialorder %v479_v52, 0.0 }
  0x73   : > { %v1179_v17 = vadd.f32 1e-08, %v477_v13  ;;  %818 = vrsqrt.f32 %v483_v15  ;;  %vm502_vm5 = vcmp.eq.f32.partialorder %v1166_v55, inf  ;;  %vm504_vm6 = vcmp.eq.f32.partialorder %v1166_v55, 0.0 }
  0x74   : > { %820 = vrsqrt.f32 %v1177_v16  ;;  %v505_v27 = vand.u32 2147483648, %v1166_v55  ;;  %vm509_vm7 = vcmp.eq.f32.partialorder %v481_v8, inf  ;;  %vm511_vm8 = vcmp.eq.f32.partialorder %v481_v8, 0.0 }
  0x75   : > { %v809_v18 = vpop.eup %808  ;;  %822 = vrsqrt.f32 %v1179_v17  ;;  %v512_v31 = vand.u32 2147483648, %v481_v8  ;;  %vm516_vm9 = vcmp.eq.f32.partialorder %v482_v12, inf  ;;  %vm518_vm10 = vcmp.eq.f32.partialorder %v482_v12, 0.0 }
  0x76   : > { %v811_v20 = vpop.eup %810  ;;  %v487_v21 = vmul.f32 %v809_v18, %v478_v48  ;;  %v519_v32 = vand.u32 2147483648, %v482_v12  ;;  %vm523_vm11 = vcmp.eq.f32.partialorder %v483_v15, inf  ;;  %vm525_vm12 = vcmp.eq.f32.partialorder %v483_v15, 0.0 }
  0x77   : > { %v494_v23 = vmul.f32 %v811_v20, %v479_v52  ;;  %v526_v37 = vand.u32 2147483648, %v483_v15  ;;  %vm530_vm13 = vcmp.eq.f32.partialorder %v1177_v16, inf  ;;  %vm532_vm14 = vcmp.eq.f32.partialorder %v1177_v16, 0.0 }
  0x78   : > { %v489_v24 = vsel %vm488_vm1, %v478_v48, %v487_v21  ;;  %v533_v45 = vand.u32 2147483648, %v1177_v16  ;;  %vm537_vm15 = vcmp.eq.f32.partialorder %v1179_v17, inf  ;;  %v540_v53 = vand.u32 2147483648, %v1179_v17 }
  0x79   : > { %v492_v1 = vsel %vm490_vm2, %v491_v19, %v489_v24  ;;  %v496_v4 = vsel %vm495_vm3, %v479_v52, %v494_v23  ;;  %v813_v26 = vpop.eup %812  ;;  %vm539_vm0 = vcmp.eq.f32.partialorder %v1179_v17, 0.0 }
  0x7a   : > { %v499_v25 = vsel %vm497_vm4, %v498_v22, %v496_v4  ;;  %v501_v28 = vmul.f32 %v813_v26, %v1166_v55  ;;  %v815_v30 = vpop.eup %814 }
  0x7b   : > { %v542_v29 = vadd.f32 %v499_v25, %v492_v1  ;;  %v508_v7 = vmul.f32 %v815_v30, %v481_v8 }
  0x7c   : > { %v817_v33 = vpop.eup %816  ;;  %v503_v3 = vsel %vm502_vm5, %v1166_v55, %v501_v28 }
  0x7d   : > { %v819_v34 = vpop.eup %818  ;;  %v506_v35 = vsel %vm504_vm6, %v505_v27, %v503_v3  ;;  %v515_v36 = vmul.f32 %v817_v33, %v482_v12  ;;  %v510_v39 = vsel %vm509_vm7, %v481_v8, %v508_v7 }
  0x7e   : > { %v821_v38 = vpop.eup %820  ;;  %v522_v40 = vmul.f32 %v819_v34, %v483_v15  ;;  %v543_v41 = vadd.f32 %v542_v29, %v506_v35  ;;  %v513_v42 = vsel %vm511_vm8, %v512_v31, %v510_v39 }
  0x7f   : > { %v517_v43 = vsel %vm516_vm9, %v482_v12, %v515_v36  ;;  %v529_v44 = vmul.f32 %v821_v38, %v1177_v16  ;;  %v823_v46 = vpop.eup %822 }
  0x80   : > { %v520_v47 = vsel %vm518_vm10, %v519_v32, %v517_v43  ;;  %v524_v48 = vsel %vm523_vm11, %v483_v15, %v522_v40  ;;  %v544_v49 = vadd.f32 %v543_v41, %v513_v42  ;;  %v536_v52 = vmul.f32 %v823_v46, %v1179_v17 }
  0x81   : > { %v527_v50 = vsel %vm525_vm12, %v526_v37, %v524_v48  ;;  %v531_v51 = vsel %vm530_vm13, %v1177_v16, %v529_v44 }
  0x82   : > { %v545_v54 = vadd.f32 %v544_v49, %v520_v47  ;;  %v534_v55 = vsel %vm532_vm14, %v533_v45, %v531_v51  ;;  %v538_v56 = vsel %vm537_vm15, %v1179_v17, %v536_v52 }
  0x83   : > { %v541_v58 = vsel %vm539_vm0, %v540_v53, %v538_v56 }
  0x84   : > { %v546_v57 = vadd.f32 %v545_v54, %v527_v50 }
  0x86   : > { %v547_v59 = vadd.f32 %v546_v57, %v534_v55 }
  0x88   : > { %v548_v61 = vadd.f32 %v547_v59, %v541_v58 }
  0x8a   : > { %v550_v62 = vadd.f32 %v549_v60, %v548_v61 }
  0x8c   : > { %551 = vst [vmem:[#allocation2] sm:$0x3] %v550_v62 }
  0x8d PF: > { %p697_p0 = scmp.lt.s32.totalorder %s949_s11, 1 }
  0x8e   : > { %vm557_vm1 = vcmask (!%p697_p0), 1041408   ;;  %v964_v0 = vmov (!%p697_p0), 269488144   ;;  %v566_v5 = vlaneseq (!%p697_p0) }
  0x8f   : > { %555 = sbr.rel (%p697_p0) target bundleno = 297 (0x129), region = 40  ;;  %v564_v2 = vunpack.c.l.s4 (!%p697_p0), %v964_v0 }
  0x90   : > { %v567_v8 = vshrl.u32 (!%p697_p0), %v566_v5, 7 }
  0x91   : > { %v565_v6 = vunpack.c.0.s8 (!%p697_p0), %v564_v2 }
  0x93   : > { %v556_v63 = vld [vmem:[#allocation2] sm:$0x3] (!%p697_p0)  ;;  %v568_v9 = vsub.s32 (!%p697_p0), %v565_v6, %v567_v8 }
  0x94   : > { %v558_v14 = vsel (!%p697_p0), %vm557_vm1, %v556_v63, 0.0 }
  0x95   : > { %559 = vadd.xlane.f32.xlu0 (!%p697_p0), %v558_v14 }
 0x122   : > { %v560_v10 = vpop.xlane.xlu0 %559 }
 0x123   : > { %v561_v11 = vmul.f32 0.0009765625, %v560_v10 }
 0x125   : > { %v569_v12 = vrot.slane %v561_v11, %v568_v9 }
 0x127   : > { %571 = vst [vmem:[%s1084_s29] sm:$0xff] %v569_v12  ;;  %572 = vst [vmem:[%s1084_s29 + $0x8] sm:$0xff] %v569_v12 }
 0x128   : > { %573 = vst [vmem:[%s1084_s29 + $0x10] sm:$0xff] %v569_v12  ;;  %574 = vst [vmem:[%s1084_s29 + $0x18] sm:$0xff] %v569_v12 }
 0x129 PF: > { %s1217_s18 = scalar_lea.sflag [#allocation5], %s156_s26  ;;  %p1306_p2 = scmp.ne.s32.totalorder %s1301_s22, 0 }
 0x12a   : > { %s699_s30 = sshll.u32 (%p1306_p2), %s949_s11, 3 }
 0x12b   : > { %582 = sbr.rel (!%p1306_p2) target bundleno = 335 (0x14f), region = 44  ;;  %s584_s2 = ssub.s32 (%p1306_p2), 10, %s699_s30 }
 0x12c   : > { %p585_p4 = scmp.lt.s32.totalorder (%p1306_p2), %s584_s2, 8 }
 0x132   : > { %s1318_s2 = smov (!%p585_p4, %s584_s2), 8 }
 0x133   : > { %s1225_s3 = sshll.u32 %s1318_s2, 6 }
 0x134   : > { %s589_s4 = ssub.s32 512, %s1225_s3 }
 0x135   : > { %590 = vsyncadd %s1217_s18, %s589_s4  ;;  %p701_p10 = scmp.ne.s32.totalorder %s1225_s3, 0  ;;  %s709_s22 = sshll.u32 %s949_s11, 8 }
 0x136   : > { %s1234_s14 = scalar_lea.hbm %s1296_s1, %s709_s22  ;;  %s703_s15 = sshll.u32 %s1318_s2, 1 }
 0x137   : > { %s598_s17 = sshll.u32 %s1084_s29, 4  ;;  %s965_s20 = smov [#allocation6]   ;;  %s1238_s17 = int_to_ptr.vmem [resolvable:$true] %s598_s17 }
 0x138   : > { %s854_s19 = scalar_lea.vmem %s1238_s17, %s1225_s3  ;;  %s858_s24 = sshll.u32 %s965_s20, 4  ;;  %s859_s24 = int_to_ptr.vmem [resolvable:$false] %s858_s24 }
 0x139   : > { %p855_p11 = scmp.ne.s32.totalorder %s1238_s17, %s854_s19  ;;  %s860_s11 = scalar_lea.vmem %s859_s24, 1024 }
 0x13a   : > { %p861_p7 = scmp.lt.s32.totalorder %s1238_s17, %s859_s24  ;;  %p862_p8 = scmp.lt.s32.totalorder %s860_s11, %s854_s19 }
 0x13b   : > { %p856_p1 = pnand %p855_p11, %p701_p10 }
 0x13c   : > { %p863_p9 = por %p862_p8, %p861_p7 }
 0x13d   : > { %p857_p3 = pneg %p856_p1 }
 0x13f   : > { %p864_p5 = pnand %p863_p9, %p857_p3 }
 0x141   : > { %867 = shalt.err (!%p864_p5)
}
 0x142   : > { %s868_s27 = scalar_lea.hbm %s1234_s14, %s1225_s3  ;;  %s872_s25 = scalar_lea.hbm %s1296_s1, 640 }
 0x143   : > { %p869_p6 = scmp.ne.s32.totalorder %s1234_s14, %s868_s27  ;;  %p873_p0 = scmp.lt.u32.totalorder %s1234_s14, %s1296_s1 }
 0x144   : > { %p874_p2 = scmp.lt.u32.totalorder %s872_s25, %s868_s27  ;;  %p876_p11 = scmp.lt.u32.totalorder %s868_s27, %s1234_s14 }
 0x145   : > { %p870_p12 = pnand %p869_p6, %p701_p10 }
 0x146   : > { %p875_p4 = por %p874_p2, %p873_p0 }
 0x147   : > { %p871_p13 = pneg %p870_p12 }
 0x148   : > { %p877_p1 = por %p876_p11, %p875_p4 }
 0x14a   : > { %p878_p3 = pnand %p877_p1, %p871_p13 }
 0x14c   : > { %881 = shalt.err (!%p878_p3)
}
 0x14d   : > { %s966_s4 = smov 256   ;;  %s967_s22 = smov 320  }
 0x14e   : > { %604 = dma.vmem_to_hbm [thread:$0]  (%p701_p10), %s1238_s17, %s1225_s3, %s1234_s14, %s1217_s18, %s966_s4, %s967_s22, %s703_s15  }
 0x14f PF: > { %s613_s5 = sand.u32 1, %s929_s6   ;;  %p1307_p7 = scmp.ne.s32.totalorder %s1302_s23, 0 }
 0x150   : > { %p1308_p8 = scmp.ge.s32.totalorder %s957_s13, 2  ;;  %s614_s9 = scalar_lea.sflag [#allocation5], %s613_s5 }
 0x152   : > { %p720_p9 = pnand %p1308_p8, %p1307_p7 }
 0x154   : > { %923 = dma.done.wait (!%p720_p9), %s614_s9, 512  }
 0x155   : > { %925 = vsyncadd (!%p720_p9), %s614_s9, 4294966784  ;;  %s17_s13 = sadd.s32 1, %s957_s13   ;;  %s1309_s6 = smov %s933_s7 }
 0x156   : > { %p14_p5 = scmp.ge.s32.totalorder %s17_s13, 4   ;;  %s1310_s7 = smov %s937_s8 }
 0x157   : > { %s1311_s8 = smov %s1036_s21  ;;  %s1312_s9 = smov %s945_s10 }
 0x158   : > { %s1285_s10 = smov 0   ;;  %s1313_s11 = smov %s953_s12 }
 0x159   : > { %s1314_s12 = smov %s1316_s16  ;;  %16 = sbr.rel (!%p14_p5) target bundleno = 7 (0x7), region = 81 }
 0x160   :  { %619 = vsyncpa [#allocation4], 1 }
 0x161   :  { %621 = vsyncpa [#allocation4 + $0x1], 1 }
 0x162   :  { %622 = vsyncpa [#allocation5], 1 }
 0x163   :  { %624 = vsyncpa [#allocation5 + $0x1], 1 }

</bundles_post_ra>
